<compile_context>
chip_gen: v7x
topology: tpu7x:2x2x1
jax: 0.10.0
libtpu: 0.0.40
codegen_flags: <defaults>
</compile_context>

<pallas_src>
import jax
import jax.numpy as jnp
from jax.experimental import pallas as pl
from jax.experimental.pallas import tpu as pltpu


def _round_up(x: int, m: int) -> int:
    return -(-x // m) * m


def _vmem_limit_bytes() -> int:
    """Scoped-VMEM limit to request: ~3/4 of physical VMEM, capped at 96 MiB."""
    cap = None
    try:
        cap = int(getattr(pltpu.get_tpu_info(), "vmem_capacity_bytes"))
    except Exception:
        cap = None
    if not cap:
        kind = ""
        try:
            kind = jax.devices()[0].device_kind.lower()
        except Exception:
            pass
        cap = 64 * 2**20 if "v7" in kind else 128 * 2**20   # v7x: 64 MiB / core
    return int(min(cap * 3 // 4, 96 * 2**20))


def _pick_h_fold(H: int, W: int, s: int, cd_itemsize: int,
                 p_budget_bytes: int = 4 * 2**20) -> int:
    """Fold Ht rows of H into the lane axis so lanes >= 128 when W is small."""
    if W >= 128 or s == 1:
        return 1
    best = 1
    for ht in range(1, H + 1):
        if H % ht:
            continue
        p_bytes = (s * s) * (ht * W) * (ht * s * s * W) * cd_itemsize
        if p_bytes > p_budget_bytes:
            break
        best = ht
        if ht * W >= 128:
            break
    return best


def _pick_row_tile(rows: int, fits, cap: int = 2048) -> int:
    """Largest row tile (mult-of-8 divisor of rows, or rows itself) that fits."""
    candidates = [d for d in range(8, min(rows, cap) + 1, 8) if rows % d == 0]
    if rows <= cap:
        candidates.append(rows)          # full extent is always layout-legal
    fitting = [d for d in candidates if fits(d)]
    if fitting:
        return max(fitting)
    if candidates:
        return min(candidates)           # nothing fits budget: smallest legal tile
    return rows                          # no multiple-of-8 divisor exists at all


def expand_pallas(x: jnp.ndarray, gain: int = 2) -> jnp.ndarray:
    B, C, H, W = x.shape
    s = int(gain)
    assert C % (s * s) == 0, "channels must be divisible by gain**2"
    c_out = C // (s * s)
    if s == 1:
        return x

    if x.dtype in (jnp.bfloat16, jnp.float32):
        compute_dtype = x.dtype          # one-hot scatter copies values exactly
    else:
        # TODO(synk): integer inputs with |x| >= 2**24 lose precision through
        # the f32 one-hot matmul path; a bitcast/copy path would be needed.
        compute_dtype = jnp.float32
    cd_itemsize = jnp.dtype(compute_dtype).itemsize
    in_itemsize = jnp.dtype(x.dtype).itemsize

    # ---- layout selection -------------------------------------------------
    ht = _pick_h_fold(H, W, s, cd_itemsize)
    per_s1 = (ht == 1) and (W >= 128) and ((s * W) % 128 == 0)

    lane_in = ht * W                     # input lanes per (s1, s2) group
    total_lanes = ht * s * s * W         # output lanes per folded row
    rows = c_out * (H // ht)             # folded row axis (matmul M dim)
    if per_s1:
        n_stores, grp_per_store, store_lanes = s, s, s * W
    else:
        n_stores, grp_per_store, store_lanes = 1, s * s, total_lanes

    # ---- one-hot lane-scatter matrices --------------------------------------
    l_out = jnp.arange(store_lanes)[None, :]
    mats = []
    if per_s1:
        # P[s2, w, w*s + s2] = 1                                    (s, W, s*W)
        src = jnp.arange(W)[:, None]
        for s2 in range(s):
            mats.append((l_out == (src * s + s2)).astype(compute_dtype))
    else:
        # P[g, ht*W + w, ht*s*s*W + s1*s*W + w*s + s2] = 1  (s*s, Ht*W, Ht*s*s*W)
        hh = jnp.arange(ht)[:, None]
        ww = jnp.arange(W)[None, :]
        for g in range(s * s):
            s1, s2 = divmod(g, s)
            tgt = (hh * (s * s * W) + s1 * (s * W) + ww * s + s2).reshape(-1, 1)
            mats.append((l_out == tgt).astype(compute_dtype))
    p = jnp.stack(mats, axis=0)

    # Free (contiguous, row-major) input view: (B, s*s, rows, Ht*W).
    x_view = x.reshape(B, s * s, rows, lane_in)

    # ---- tiling / VMEM budget ------------------------------------------------
    vmem_limit = _vmem_limit_bytes()
    p_bytes = (p.shape[0] * _round_up(p.shape[1], 8)
               * _round_up(p.shape[2], 128) * cd_itemsize)

    def _block_bytes(rt: int) -> int:
        rt_p = _round_up(rt, 8)
        in_b = (s * s) * rt_p * _round_up(lane_in, 128) * in_itemsize
        out_b = rt_p * _round_up(total_lanes, 128) * in_itemsize
        tmp_b = 2 * rt_p * _round_up(store_lanes, 128) * cd_itemsize
        return 2 * (in_b + out_b) + tmp_b      # in/out blocks double-buffered

    budget = max(vmem_limit - 2 * p_bytes - 2 * 2**20, 4 * 2**20)
    row_tile = _pick_row_tile(rows, lambda rt: _block_bytes(rt) <= budget)

    # Keep >= 2 grid steps so both TensorCores get work (megacore / v7x).
    if B * (rows // row_tile) < 2:
        smaller = [d for d in range(8, rows, 8) if rows % d == 0]
        if smaller:
            row_tile = max(smaller)

    grid = (B, rows // row_tile)

    # ---- kernel ---------------------------------------------------------------
    def kernel(x_ref, p_ref, o_ref):
        # x_ref: (1, s*s, row_tile, lane_in)
        # p_ref: (s*s or s, lane_in, store_lanes)   one-hot lane scatters
        # o_ref: (1, row_tile, total_lanes)
        for j in range(n_stores):
            acc = None
            for i in range(grp_per_store):
                g = j * grp_per_store + i
                chunk = x_ref[0, g]
                if chunk.dtype != compute_dtype:
                    chunk = chunk.astype(compute_dtype)
                part = jnp.dot(chunk, p_ref[i if per_s1 else g],
                               preferred_element_type=compute_dtype)
                acc = part if acc is None else acc + part
            if acc.dtype != o_ref.dtype:
                acc = acc.astype(o_ref.dtype)
            # Offset-0 (or 128-aligned) full-width lane-dense store.
            o_ref[0, :, j * store_lanes:(j + 1) * store_lanes] = acc

    flops = 2 * B * rows * lane_in * store_lanes * n_stores * grp_per_store
    cost = pl.CostEstimate(flops=flops, transcendentals=0,
                           bytes_accessed=2 * B * C * H * W * in_itemsize)

    out_view = pl.pallas_call(
        kernel,
        out_shape=jax.ShapeDtypeStruct((B, rows, total_lanes), x.dtype),
        grid=grid,
        in_specs=[
            pl.BlockSpec((1, s * s, row_tile, lane_in), lambda b, r: (b, 0, r, 0)),
            pl.BlockSpec(p.shape, lambda b, r: (0, 0, 0)),
        ],
        out_specs=pl.BlockSpec((1, row_tile, total_lanes), lambda b, r: (b, r, 0)),
        compiler_params=pltpu.CompilerParams(
            dimension_semantics=("parallel", "parallel"),
            vmem_limit_bytes=vmem_limit,
        ),
        cost_estimate=cost,
    )(x_view, p)

    # Free row-major reshape back to NCHW output.
    return out_view.reshape(B, c_out, H * s, W * s)


def expand_reference(x: jnp.ndarray, gain: int = 2) -> jnp.ndarray:
    """Pure-JAX reference mirroring the PyTorch forward."""
    B, C, H, W = x.shape
    s = gain
    c_out = C // (s * s)
    y = x.reshape(B, s, s, c_out, H, W)
    y = jnp.transpose(y, (0, 3, 4, 1, 5, 2))
    return y.reshape(B, c_out, H * s, W * s)


if __name__ == "__main__":
    key = jax.random.PRNGKey(0)
    B, C, H, W = 2, 16, 16, 16     # gain=2 -> out shape (2, 4, 32, 32)
    gain = 2
    x = jax.random.normal(key, (B, C, H, W), dtype=jnp.float32)

    out = expand_pallas(x, gain=gain)
    out = jax.block_until_ready(out)

    ref = expand_reference(x, gain=gain)
    assert out.shape == ref.shape, (out.shape, ref.shape)
    assert jnp.array_equal(out, ref), "mismatch vs reference"

    print("KERNEL_OK")
</pallas_src>

<mosaic_0001>
module attributes {stable_mosaic.version = 11 : i64} {
  func.func @kernel(%arg0: i32, %arg1: i32, %arg2: memref<1x4x8x128xf32, #tpu.memory_space<vmem>>, %arg3: memref<4x128x512xf32, #tpu.memory_space<vmem>>, %arg4: memref<1x8x512xf32, #tpu.memory_space<vmem>>) attributes {dimension_semantics = [#tpu.dimension_semantics<parallel>, #tpu.dimension_semantics<parallel>], iteration_bounds = array<i64: 2, 1>, scalar_prefetch = 0 : i64, scratch_operands = 0 : i64, tpu.core_type = #tpu.core_type<tc>, window_params = [{transform_indices = @transform_0, window_bounds = array<i64: 1, 4, 8, 128>}, {pipeline_mode = #tpu.pipeline_mode<synchronous>, transform_indices = @transform_1, window_bounds = array<i64: 4, 128, 512>}, {transform_indices = @transform_2, window_bounds = array<i64: 1, 8, 512>}]} {
    %c0 = arith.constant 0 : index
    %c0_0 = arith.constant 0 : index
    %c0_1 = arith.constant 0 : index
    %c0_2 = arith.constant 0 : index
    %0 = vector.load %arg2[%c0, %c0_0, %c0_1, %c0_2] : memref<1x4x8x128xf32, #tpu.memory_space<vmem>>, vector<1x1x8x128xf32>
    %1 = vector.shape_cast %0 : vector<1x1x8x128xf32> to vector<8x128xf32>
    %c0_3 = arith.constant 0 : index
    %c0_4 = arith.constant 0 : index
    %c0_5 = arith.constant 0 : index
    %2 = vector.load %arg3[%c0_3, %c0_4, %c0_5] : memref<4x128x512xf32, #tpu.memory_space<vmem>>, vector<1x128x512xf32>
    %3 = vector.shape_cast %2 : vector<1x128x512xf32> to vector<128x512xf32>
    %cst = arith.constant dense<0.000000e+00> : vector<8x512xf32>
    %4 = tpu.matmul %1, %3, %cst {dimension_numbers = #tpu.dot_dimension_numbers<[1], [0], [0], [1], [0, 0, 1, 1], [], []>} : vector<8x128xf32>, vector<128x512xf32>, vector<8x512xf32> -> vector<8x512xf32>
    %c0_6 = arith.constant 0 : index
    %c1 = arith.constant 1 : index
    %c0_7 = arith.constant 0 : index
    %c0_8 = arith.constant 0 : index
    %5 = vector.load %arg2[%c0_6, %c1, %c0_7, %c0_8] : memref<1x4x8x128xf32, #tpu.memory_space<vmem>>, vector<1x1x8x128xf32>
    %6 = vector.shape_cast %5 : vector<1x1x8x128xf32> to vector<8x128xf32>
    %c1_9 = arith.constant 1 : index
    %c0_10 = arith.constant 0 : index
    %c0_11 = arith.constant 0 : index
    %7 = vector.load %arg3[%c1_9, %c0_10, %c0_11] : memref<4x128x512xf32, #tpu.memory_space<vmem>>, vector<1x128x512xf32>
    %8 = vector.shape_cast %7 : vector<1x128x512xf32> to vector<128x512xf32>
    %cst_12 = arith.constant dense<0.000000e+00> : vector<8x512xf32>
    %9 = tpu.matmul %6, %8, %cst_12 {dimension_numbers = #tpu.dot_dimension_numbers<[1], [0], [0], [1], [0, 0, 1, 1], [], []>} : vector<8x128xf32>, vector<128x512xf32>, vector<8x512xf32> -> vector<8x512xf32>
    %10 = arith.addf %4, %9 : vector<8x512xf32>
    %c0_13 = arith.constant 0 : index
    %c2 = arith.constant 2 : index
    %c0_14 = arith.constant 0 : index
    %c0_15 = arith.constant 0 : index
    %11 = vector.load %arg2[%c0_13, %c2, %c0_14, %c0_15] : memref<1x4x8x128xf32, #tpu.memory_space<vmem>>, vector<1x1x8x128xf32>
    %12 = vector.shape_cast %11 : vector<1x1x8x128xf32> to vector<8x128xf32>
    %c2_16 = arith.constant 2 : index
    %c0_17 = arith.constant 0 : index
    %c0_18 = arith.constant 0 : index
    %13 = vector.load %arg3[%c2_16, %c0_17, %c0_18] : memref<4x128x512xf32, #tpu.memory_space<vmem>>, vector<1x128x512xf32>
    %14 = vector.shape_cast %13 : vector<1x128x512xf32> to vector<128x512xf32>
    %cst_19 = arith.constant dense<0.000000e+00> : vector<8x512xf32>
    %15 = tpu.matmul %12, %14, %cst_19 {dimension_numbers = #tpu.dot_dimension_numbers<[1], [0], [0], [1], [0, 0, 1, 1], [], []>} : vector<8x128xf32>, vector<128x512xf32>, vector<8x512xf32> -> vector<8x512xf32>
    %16 = arith.addf %10, %15 : vector<8x512xf32>
    %c0_20 = arith.constant 0 : index
    %c3 = arith.constant 3 : index
    %c0_21 = arith.constant 0 : index
    %c0_22 = arith.constant 0 : index
    %17 = vector.load %arg2[%c0_20, %c3, %c0_21, %c0_22] : memref<1x4x8x128xf32, #tpu.memory_space<vmem>>, vector<1x1x8x128xf32>
    %18 = vector.shape_cast %17 : vector<1x1x8x128xf32> to vector<8x128xf32>
    %c3_23 = arith.constant 3 : index
    %c0_24 = arith.constant 0 : index
    %c0_25 = arith.constant 0 : index
    %19 = vector.load %arg3[%c3_23, %c0_24, %c0_25] : memref<4x128x512xf32, #tpu.memory_space<vmem>>, vector<1x128x512xf32>
    %20 = vector.shape_cast %19 : vector<1x128x512xf32> to vector<128x512xf32>
    %cst_26 = arith.constant dense<0.000000e+00> : vector<8x512xf32>
    %21 = tpu.matmul %18, %20, %cst_26 {dimension_numbers = #tpu.dot_dimension_numbers<[1], [0], [0], [1], [0, 0, 1, 1], [], []>} : vector<8x128xf32>, vector<128x512xf32>, vector<8x512xf32> -> vector<8x512xf32>
    %22 = arith.addf %16, %21 : vector<8x512xf32>
    %c0_27 = arith.constant 0 : index
    %c0_28 = arith.constant 0 : index
    %c0_29 = arith.constant 0 : index
    %23 = vector.load %arg4[%c0_27, %c0_28, %c0_29] : memref<1x8x512xf32, #tpu.memory_space<vmem>>, vector<1x8x512xf32>
    %24 = vector.shape_cast %23 : vector<1x8x512xf32> to vector<8x512xf32>
    %25 = vector.shape_cast %22 : vector<8x512xf32> to vector<1x8x512xf32>
    tpu.vector_store %arg4[%c0_27, %c0_28, %c0_29], %25 {strides = array<i32>} : memref<1x8x512xf32, #tpu.memory_space<vmem>>, vector<1x8x512xf32>,
    return
  }
  func.func @transform_0(%arg0: i32, %arg1: i32) -> (i32, i32, i32, i32) {
    %c0_i32 = arith.constant 0 : i32
    %c0_i32_0 = arith.constant 0 : i32
    %c0_i32_1 = arith.constant 0 : i32
    return %arg0, %c0_i32, %arg1, %c0_i32_0 : i32, i32, i32, i32
  }
  func.func @transform_1(%arg0: i32, %arg1: i32) -> (i32, i32, i32) {
    %c0_i32 = arith.constant 0 : i32
    %c0_i32_0 = arith.constant 0 : i32
    %c0_i32_1 = arith.constant 0 : i32
    %c0_i32_2 = arith.constant 0 : i32
    return %c0_i32, %c0_i32_0, %c0_i32_1 : i32, i32, i32
  }
  func.func @transform_2(%arg0: i32, %arg1: i32) -> (i32, i32, i32) {
    %c0_i32 = arith.constant 0 : i32
    %c0_i32_0 = arith.constant 0 : i32
    return %arg0, %arg1, %c0_i32 : i32, i32, i32
  }
}

</mosaic_0001>

<bundles_post_ra>
// kernel: tpu_custom_call.1
= control target key start
LH: loop header
LB: loop body
LE: loop exit
PB: predicated region body
PF: predicated region fallthrough
CT: control target
= control target key end

     0   :  { %7 = vsyncpa [#allocation3], 0  ;;  %s1922_s0 = inlined_call_operand.hbm [shape: f32[2,4,8,128], index: 0, kind: input, shape index: {}]   ;;  %s1923_s1 = inlined_call_operand.hbm [shape: f32[4,128,512], index: 1, kind: input, shape index: {}]   ;;  %s1924_s2 = inlined_call_operand.hbm [shape: f32[2,8,512], index: 2, kind: output, shape index: {}]  }
   0x1   :  { %9 = vsyncpa [#allocation3 + $0x1], 0 }
   0x2   :  { %10 = vsyncpa [#allocation6], 0 }
   0x3   :  { %11 = vsyncpa [#allocation4], 0 }
   0x4   :  { %13 = vsyncpa [#allocation4 + $0x1], 0  ;;  %s1687_s9 = smov 0   ;;  %s1689_s10 = smov 0  }
   0x5   :  { %s1691_s11 = smov 0   ;;  %s1693_s12 = smov 0  }
   0x6   :  { %s1695_s13 = smov 0   ;;  %s1697_s14 = smov 0  }
   0x7 LB: > { %s1150_s15 = sadd.s32 4294967295, %s1662_s14   ;;  %s1151_s16 = sadd.s32 4294967294, %s1662_s14   ;;  %s1662_s14 = sphi %s1697_s14, %s19_s14   ;;  %s1658_s13 = sphi %s1695_s13, %s1948_s13   ;;  %s1654_s12 = sphi %s1693_s12, %s1947_s12   ;;  %s1650_s11 = sphi %s1691_s11, %s1946_s11   ;;  %s1646_s10 = sphi %s1689_s10, %s1945_s10   ;;  %s1642_s9 = sphi %s1687_s9, %s1944_s9  }
   0x8   : > { %p53_p0 = scmp.ne.s32.totalorder %s1646_s10, %s1642_s9  ;;  %p1721_p1 = scmp.eq.s32.totalorder %s1150_s15, 0 }
   0x9   : > { %p1725_p2 = scmp.eq.s32.totalorder %s1150_s15, 1  ;;  %p106_p3 = scmp.eq.s32.totalorder %s1151_s16, 1 }
   0xa   : > { %s1929_s17 = scalar_select %p1721_p1, 1, 0 }
   0xb   : > { %s1930_s18 = scalar_select %p1725_p2, 1, 0 }
   0xc   : > { %p1731_p4 = por %p1721_p1, %p53_p0  ;;  %p1152_p5 = scmp.ge.s32.totalorder %s1662_s14, 1 }
   0xd   : > { %p1736_p6 = por %p106_p3, %p53_p0  ;;  %p113_p7 = scmp.lt.s32.totalorder %s1662_s14, 3 }
   0xe   : > { %s1931_s19 = scalar_select %p1731_p4, 1, 0 }
   0xf   : > { %s1932_s20 = scalar_select %p1736_p6, 1, 0 }
  0x10   : > { %p1741_p8 = pnand %p1152_p5, %p113_p7  ;;  %s1664_s22 = smov [#allocation5]  }
  0x11   : > { %s125_s23 = sshll.u32 %s1664_s22, 4  ;;  %s31_s25 = sadd.s32 1, %s1658_s13  ;;  %s126_s23 = int_to_ptr.vmem [resolvable:$true] %s125_s23 }
  0x12   : > { %s1933_s21 = scalar_select %p1741_p8, 1, 0 }
  0x13   : > { %p1448_p9 = pneg %p1741_p8  ;;  %s1518_s28 = scalar_lea.hbm %s1923_s1, 32768 }
  0x14   : > { %p1519_p12 = scmp.ne.s32.totalorder %s1923_s1, %s1518_s28  ;;  %p1525_p5 = scmp.lt.u32.totalorder %s1518_s28, %s1923_s1 }
  0x15   : > { %p1750_p11 = pnand %p1448_p9, %p1721_p1 }
  0x17   : > { %p1520_p13 = pneg %p1750_p11 }
  0x19   : > { %p1521_p0 = pnand %p1520_p13, %p1519_p12 }
  0x1b   : > { %p1522_p3 = pneg %p1521_p0 }
  0x1d   : > { %p1527_p7 = pnand %p1525_p5, %p1522_p3 }
  0x1f   : > { %1530 = shalt.err (!%p1527_p7)
}
  0x20   : > { %s1531_s5 = scalar_lea.vmem %s126_s23, 32768  ;;  %p1539_p1 = scmp.lt.s32.totalorder %s126_s23, %s126_s23 }
  0x21   : > { %p1532_p9 = scmp.ne.s32.totalorder %s126_s23, %s1531_s5  ;;  %p1540_p4 = scmp.lt.s32.totalorder %s1531_s5, %s1531_s5 }
  0x23   : > { %p1534_p10 = pnand %p1532_p9, %p1520_p13  ;;  %p1541_p8 = por %p1540_p4, %p1539_p1 }
  0x25   : > { %p1535_p6 = pneg %p1534_p10 }
  0x27   : > { %p1542_p2 = pnand %p1541_p8, %p1535_p6 }
  0x29   : > { %1545 = shalt.err (!%p1542_p2)
}
  0x2a   : > { %s1665_s6 = smov 512   ;;  %s1666_s7 = smov 32  }
  0x2b   : > { %1451 = dma.hbm_to_vmem [thread:$0]  (!%p1750_p11), %s1923_s1, 32768, %s126_s23, [#allocation6], %s1665_s6, %s1665_s6, %s1666_s7  }
  0x2c   : > { %p33_p1 = scmp.ge.s32.totalorder %s31_s25, 2  ;;  %s40_s16 = sadd.s32 1, %s1650_s11 }
  0x2d   : > { %p47_p2 = scmp.ne.s32.totalorder %s1650_s11, %s1646_s10  ;;  %p48_p4 = scmp.eq.s32.totalorder %s1662_s14, 0 }
  0x2e   : > { %s1950_s25 = smov (%p33_p1, %s31_s25), 0  ;;  %p1936_p8 = scmp.ne.s32.totalorder %s1930_s18, 0 }
  0x2f   : > { %p1777_p6 = por %p48_p4, %p47_p2  ;;  %s35_s24 = ssub.s32 %s1658_s13, %s1950_s25 }
  0x30   : > { %p1783_p10 = por %p1936_p8, %p47_p2  ;;  %p1461_p12 = scmp.lt.s32.totalorder %s1662_s14, 2 }
  0x31   : > { %p38_p11 = scmp.eq.s32.totalorder %s35_s24, 0  ;;  %s139_s23 = sand.u32 1, %s1650_s11  }
  0x32   : > { %s1155_s27 = sshll.u32 %s139_s23, 5  ;;  %s1170_s29 = sshll.u32 %s1658_s13, 9 }
  0x33   : > { %s1792_s28 = scalar_select %p38_p11, %s1650_s11, %s40_s16  }
  0x34   : > { %s1798_s4 = scalar_lea.hbm %s1922_s0, %s1170_s29  ;;  %s143_s18 = scalar_lea.vmem [#allocation2], %s1155_s27 }
  0x35   : > { %s151_s5 = sshll.u32 %s143_s18, 4  ;;  %p1804_p13 = pnand %p1461_p12, %p1777_p6  ;;  %s1800_s5 = int_to_ptr.vmem [resolvable:$true] %s151_s5 }
  0x36   : > { %s1808_s7 = scalar_lea.sflag [#allocation3], %s139_s23  ;;  %s1546_s8 = scalar_lea.hbm %s1798_s4, 512 }
  0x37   : > { %p1547_p0 = scmp.ne.s32.totalorder %s1798_s4, %s1546_s8  ;;  %p1548_p3 = pneg %p1804_p13 }
  0x38   : > { %s1551_s22 = scalar_lea.hbm %s1922_s0, 1024  ;;  %p1552_p9 = scmp.lt.u32.totalorder %s1798_s4, %s1922_s0 }
  0x39   : > { %p1549_p5 = pnand %p1548_p3, %p1547_p0  ;;  %p1553_p1 = scmp.lt.u32.totalorder %s1551_s22, %s1546_s8 }
  0x3a   : > { %p1555_p4 = scmp.lt.u32.totalorder %s1546_s8, %s1798_s4 }
  0x3b   : > { %p1550_p7 = pneg %p1549_p5  ;;  %p1554_p2 = por %p1553_p1, %p1552_p9 }
  0x3d   : > { %p1556_p6 = por %p1555_p4, %p1554_p2 }
  0x3f   : > { %p1557_p8 = pnand %p1556_p6, %p1550_p7 }
  0x41   : > { %1560 = shalt.err (!%p1557_p8)
}
  0x42   : > { %s1561_s23 = scalar_lea.vmem %s1800_s5, 512  ;;  %s1667_s29 = smov [#allocation2]  }
  0x43   : > { %p1562_p12 = scmp.ne.s32.totalorder %s1800_s5, %s1561_s23  ;;  %s1566_s30 = sshll.u32 %s1667_s29, 4  ;;  %s1567_s30 = int_to_ptr.vmem [resolvable:$false] %s1566_s30 }
  0x44   : > { %s1568_s3 = scalar_lea.vmem %s1567_s30, 1024  ;;  %p1569_p5 = scmp.lt.s32.totalorder %s1800_s5, %s1567_s30 }
  0x45   : > { %p1564_p11 = pnand %p1562_p12, %p1548_p3  ;;  %p1570_p9 = scmp.lt.s32.totalorder %s1568_s3, %s1561_s23 }
  0x47   : > { %p1565_p0 = pneg %p1564_p11  ;;  %p1571_p1 = por %p1570_p9, %p1569_p5 }
  0x49   : > { %p1572_p2 = pnand %p1571_p1, %p1565_p0 }
  0x4b   : > { %1575 = shalt.err (!%p1572_p2)
}
  0x4c   : > { %s1668_s18 = smov 128   ;;  %s1669_s8 = smov 8  }
  0x4d   : > { %1455 = dma.hbm_to_vmem [thread:$0]  (!%p1804_p13), %s1798_s4, 512, %s1800_s5, %s1808_s7, %s1668_s18, %s1668_s18, %s1669_s8  }
  0x4e   : > { %p1939_p3 = scmp.ne.s32.totalorder %s1933_s21, 0 }
  0x4f   : > { %s1839_s15 = sand.u32 (!%p1939_p3), 1, %s1646_s10   ;;  %p1940_p7 = scmp.ne.s32.totalorder (!%p1939_p3), %s1931_s19, 0 }
  0x50   : > { %163 = sbr.rel (%p1939_p3) target bundleno = 451 (0x1c3), region = 28  ;;  %s1159_s16 = sshll.u32 (!%p1939_p3), %s1839_s15, 5 }
  0x51   : > { %s166_s22 = scalar_lea.sflag (!%p1939_p3), [#allocation3], %s1839_s15  ;;  %s1845_s24 = scalar_lea.vmem (!%p1939_p3), [#allocation2], %s1159_s16 }
  0x57   : > { %1629 = dma.done.wait (%p1940_p7), %s166_s22, 512  }
  0x58   : > { %1631 = vsyncadd (%p1940_p7), %s166_s22, 4294966784  ;;  %p1941_p13 = scmp.ne.s32.totalorder %s1929_s17, 0 }
  0x5a   : > { %1633 = dma.done.wait (%p1941_p13), [#allocation6], 32768  }
  0x5b   : > { %1635 = vsyncadd (%p1941_p13), [#allocation6], 4294934528  ;;  %v1670_v0 = vmov 0.0   ;;  %v263_v1 = vld [vmem:[#allocation5 + $0x208] sm:$0xff]  ;;  %v265_v3 = vld [vmem:[#allocation5 + $0x218] sm:$0xff]  ;;  %s193_s17 = scalar_lea.vmem [#allocation7], %s1159_s16 }
  0x5c   : > { %390 = vmatprep.mubr.f32.mxu0 %v1670_v0  ;;  %461 = vmatprep.mubr.f32.mxu1 %v1670_v0  ;;  %v267_v2 = vld [vmem:[#allocation5 + $0x228] sm:$0xff]  ;;  %v269_v5 = vld [vmem:[#allocation5 + $0x238] sm:$0xff]  ;;  %v262_v6 = vld [vmem:[#allocation5 + $0x200] sm:$0xff]  ;;  %s1057_s19 = sshll.u32 %s193_s17, 4  ;;  %s1171_s21 = sshll.u32 %s1654_s12, 9  ;;  %s1870_s19 = int_to_ptr.vmem [resolvable:$true] %s1057_s19 }
  0x5d   : > { %v1172_v4 = vpack.c.bf16 %v267_v2, %v263_v1  ;;  %v266_v7 = vld [vmem:[#allocation5 + $0x220] sm:$0xff]  ;;  %v1204_v8 = vpack.c.bf16 %v269_v5, %v265_v3  ;;  %v264_v10 = vld [vmem:[#allocation5 + $0x210] sm:$0xff]  ;;  %v271_v12 = vld [vmem:[#allocation5 + $0x248] sm:$0xff]  ;;  %s1875_s6 = scalar_lea.hbm %s1924_s2, %s1171_s21  ;;  %s1041_s7 = scalar_lea.sflag [#allocation4], %s1839_s15 }
  0x5e   : > { %v1174_v9 = vpack.c.bf16 %v266_v7, %v262_v6  ;;  %v268_v11 = vld [vmem:[#allocation5 + $0x230] sm:$0xff]  ;;  %v275_v14 = vld [vmem:[#allocation5 + $0x268] sm:$0xff]  ;;  %v273_v15 = vld [vmem:[#allocation5 + $0x258] sm:$0xff]  ;;  %s1576_s12 = scalar_lea.vmem %s1870_s19, 512  ;;  %s1671_s27 = smov [#allocation7]  }
  0x5f   : > { %1173 = vmatprep.subr.bf16.mxu0 %v1172_v4  ;;  %v1206_v13 = vpack.c.bf16 %v268_v11, %v264_v10  ;;  %v277_v16 = vld [vmem:[#allocation5 + $0x278] sm:$0xff]  ;;  %1205 = vmatprep.subr.bf16.mxu1 %v1204_v8  ;;  %v1176_v17 = vpack.c.bf16 %v275_v14, %v271_v12  ;;  %v270_v19 = vld [vmem:[#allocation5 + $0x240] sm:$0xff]  ;;  %v272_v21 = vld [vmem:[#allocation5 + $0x250] sm:$0xff]  ;;  %p1577_p4 = scmp.ne.s32.totalorder %s1870_s19, %s1576_s12  ;;  %s1580_s23 = sshll.u32 %s1671_s27, 4  ;;  %s1581_s23 = int_to_ptr.vmem [resolvable:$false] %s1580_s23 }
  0x60   : > { %1175 = vmatpush1.bf16.msra.mxu0 %v1174_v9  ;;  %v1208_v18 = vpack.c.bf16 %v277_v16, %v273_v15  ;;  %v274_v20 = vld [vmem:[#allocation5 + $0x260] sm:$0xff]  ;;  %v276_v23 = vld [vmem:[#allocation5 + $0x270] sm:$0xff]  ;;  %v279_v24 = vld [vmem:[#allocation5 + $0x288] sm:$0xff]  ;;  %s1582_s29 = scalar_lea.vmem %s1581_s23, 1024  ;;  %p1583_p12 = scmp.lt.s32.totalorder %s1870_s19, %s1581_s23 }
  0x61   : > { %1207 = vmatpush1.bf16.msra.mxu1 %v1206_v13  ;;  %v1178_v22 = vpack.c.bf16 %v274_v20, %v270_v19  ;;  %v283_v25 = vld [vmem:[#allocation5 + $0x2a8] sm:$0xff]  ;;  %1177 = vmatprep.subr.bf16.mxu0 %v1176_v17  ;;  %v1210_v26 = vpack.c.bf16 %v276_v23, %v272_v21  ;;  %v281_v28 = vld [vmem:[#allocation5 + $0x298] sm:$0xff]  ;;  %v278_v30 = vld [vmem:[#allocation5 + $0x280] sm:$0xff]  ;;  %p1578_p6 = pnand %p1577_p4, %p1783_p10  ;;  %p1584_p11 = scmp.lt.s32.totalorder %s1582_s29, %s1576_s12 }
  0x62   : > { %1209 = vmatprep.subr.bf16.mxu1 %v1208_v18  ;;  %v1180_v27 = vpack.c.bf16 %v283_v25, %v279_v24  ;;  %v285_v29 = vld [vmem:[#allocation5 + $0x2b8] sm:$0xff]  ;;  %v282_v32 = vld [vmem:[#allocation5 + $0x2a0] sm:$0xff]  ;;  %v280_v33 = vld [vmem:[#allocation5 + $0x290] sm:$0xff] }
  0x63   : > { %v1212_v31 = vpack.c.bf16 %v285_v29, %v281_v28  ;;  %v284_v34 = vld [vmem:[#allocation5 + $0x2b0] sm:$0xff]  ;;  %v1182_v35 = vpack.c.bf16 %v282_v32, %v278_v30  ;;  %v287_v36 = vld [vmem:[#allocation5 + $0x2c8] sm:$0xff]  ;;  %v289_v38 = vld [vmem:[#allocation5 + $0x2d8] sm:$0xff]  ;;  %p1579_p8 = pneg %p1578_p6  ;;  %p1585_p0 = por %p1584_p11, %p1583_p12 }
  0x64   : > { %1179 = vmatpush1.bf16.msra.mxu0 %v1178_v22  ;;  %v291_v37 = vld [vmem:[#allocation5 + $0x2e8] sm:$0xff]  ;;  %v1214_v39 = vpack.c.bf16 %v284_v34, %v280_v33  ;;  %v293_v41 = vld [vmem:[#allocation5 + $0x2f8] sm:$0xff]  ;;  %v286_v42 = vld [vmem:[#allocation5 + $0x2c0] sm:$0xff] }
  0x65   : > { %1211 = vmatpush1.bf16.msra.mxu1 %v1210_v26  ;;  %1181 = vmatprep.subr.bf16.mxu0 %v1180_v27  ;;  %v1184_v40 = vpack.c.bf16 %v291_v37, %v287_v36  ;;  %v290_v43 = vld [vmem:[#allocation5 + $0x2e0] sm:$0xff]  ;;  %v1216_v44 = vpack.c.bf16 %v293_v41, %v289_v38  ;;  %v288_v45 = vld [vmem:[#allocation5 + $0x2d0] sm:$0xff]  ;;  %v295_v47 = vld [vmem:[#allocation5 + $0x308] sm:$0xff]  ;;  %p1586_p5 = pnand %p1585_p0, %p1579_p8 }
  0x66   : > { %1213 = vmatprep.subr.bf16.mxu1 %v1212_v31  ;;  %v292_v46 = vld [vmem:[#allocation5 + $0x2f0] sm:$0xff]  ;;  %v299_v48 = vld [vmem:[#allocation5 + $0x328] sm:$0xff]  ;;  %v297_v49 = vld [vmem:[#allocation5 + $0x318] sm:$0xff]  ;;  %v1186_v51 = vpack.c.bf16 %v290_v43, %v286_v42 }
  0x67   : > { %v301_v50 = vld [vmem:[#allocation5 + $0x338] sm:$0xff]  ;;  %v1218_v52 = vpack.c.bf16 %v292_v46, %v288_v45  ;;  %v1188_v53 = vpack.c.bf16 %v299_v48, %v295_v47  ;;  %v294_v54 = vld [vmem:[#allocation5 + $0x300] sm:$0xff]  ;;  %v296_v56 = vld [vmem:[#allocation5 + $0x310] sm:$0xff] }
  0x68   : > { %1183 = vmatpush1.bf16.msra.mxu0 %v1182_v35  ;;  %v298_v55 = vld [vmem:[#allocation5 + $0x320] sm:$0xff]  ;;  %v1220_v57 = vpack.c.bf16 %v301_v50, %v297_v49  ;;  %v300_v58 = vld [vmem:[#allocation5 + $0x330] sm:$0xff]  ;;  %v303_v59 = vld [vmem:[#allocation5 + $0x348] sm:$0xff] }
  0x69   : > { %1215 = vmatpush1.bf16.msra.mxu1 %v1214_v39  ;;  %1185 = vmatprep.subr.bf16.mxu0 %v1184_v40  ;;  %v307_v60 = vld [vmem:[#allocation5 + $0x368] sm:$0xff]  ;;  %v305_v61 = vld [vmem:[#allocation5 + $0x358] sm:$0xff]  ;;  %v1190_v63 = vpack.c.bf16 %v298_v55, %v294_v54  ;;  %v1222_v1 = vpack.c.bf16 %v300_v58, %v296_v56  ;;  %v302_v3 = vld [vmem:[#allocation5 + $0x340] sm:$0xff] }
  0x6a   : > { %1217 = vmatprep.subr.bf16.mxu1 %v1216_v44  ;;  %v309_v62 = vld [vmem:[#allocation5 + $0x378] sm:$0xff]  ;;  %v1192_v2 = vpack.c.bf16 %v307_v60, %v303_v59  ;;  %v306_v4 = vld [vmem:[#allocation5 + $0x360] sm:$0xff]  ;;  %v304_v5 = vld [vmem:[#allocation5 + $0x350] sm:$0xff] }
  0x6b   : > { %v1224_v6 = vpack.c.bf16 %v309_v62, %v305_v61  ;;  %v308_v7 = vld [vmem:[#allocation5 + $0x370] sm:$0xff]  ;;  %v311_v8 = vld [vmem:[#allocation5 + $0x388] sm:$0xff]  ;;  %v313_v10 = vld [vmem:[#allocation5 + $0x398] sm:$0xff]  ;;  %v1194_v12 = vpack.c.bf16 %v306_v4, %v302_v3 }
  0x6c   : > { %1187 = vmatpush1.bf16.msra.mxu0 %v1186_v51  ;;  %v315_v9 = vld [vmem:[#allocation5 + $0x3a8] sm:$0xff]  ;;  %v317_v11 = vld [vmem:[#allocation5 + $0x3b8] sm:$0xff]  ;;  %v1226_v13 = vpack.c.bf16 %v308_v7, %v304_v5  ;;  %v310_v15 = vld [vmem:[#allocation5 + $0x380] sm:$0xff] }
  0x6d   : > { %1219 = vmatpush1.bf16.msra.mxu1 %v1218_v52  ;;  %1189 = vmatprep.subr.bf16.mxu0 %v1188_v53  ;;  %v1196_v14 = vpack.c.bf16 %v315_v9, %v311_v8  ;;  %v314_v16 = vld [vmem:[#allocation5 + $0x3a0] sm:$0xff]  ;;  %v312_v17 = vld [vmem:[#allocation5 + $0x390] sm:$0xff]  ;;  %v1228_v18 = vpack.c.bf16 %v317_v11, %v313_v10  ;;  %v319_v20 = vld [vmem:[#allocation5 + $0x3c8] sm:$0xff] }
  0x6e   : > { %1221 = vmatprep.subr.bf16.mxu1 %v1220_v57  ;;  %v316_v19 = vld [vmem:[#allocation5 + $0x3b0] sm:$0xff]  ;;  %v323_v21 = vld [vmem:[#allocation5 + $0x3e8] sm:$0xff]  ;;  %v321_v22 = vld [vmem:[#allocation5 + $0x3d8] sm:$0xff]  ;;  %v1198_v24 = vpack.c.bf16 %v314_v16, %v310_v15 }
  0x6f   : > { %v325_v23 = vld [vmem:[#allocation5 + $0x3f8] sm:$0xff]  ;;  %v1230_v25 = vpack.c.bf16 %v316_v19, %v312_v17  ;;  %v1200_v26 = vpack.c.bf16 %v323_v21, %v319_v20  ;;  %v318_v27 = vld [vmem:[#allocation5 + $0x3c0] sm:$0xff]  ;;  %v320_v29 = vld [vmem:[#allocation5 + $0x3d0] sm:$0xff] }
  0x70   : > { %1191 = vmatpush1.bf16.msra.mxu0 %v1190_v63  ;;  %v322_v28 = vld [vmem:[#allocation5 + $0x3e0] sm:$0xff]  ;;  %v1232_v30 = vpack.c.bf16 %v325_v23, %v321_v22  ;;  %v324_v31 = vld [vmem:[#allocation5 + $0x3f0] sm:$0xff]  ;;  %v196_v32 = vld [vmem:[#allocation5 + $0x8] sm:$0xff] }
  0x71   : > { %1223 = vmatpush1.bf16.msra.mxu1 %v1222_v1  ;;  %1193 = vmatprep.subr.bf16.mxu0 %v1192_v2  ;;  %v200_v33 = vld [vmem:[#allocation5 + $0x28] sm:$0xff]  ;;  %v198_v34 = vld [vmem:[#allocation5 + $0x18] sm:$0xff]  ;;  %v1202_v36 = vpack.c.bf16 %v322_v28, %v318_v27  ;;  %v1234_v37 = vpack.c.bf16 %v324_v31, %v320_v29  ;;  %v195_v39 = vld [vmem:[#allocation5] sm:$0xff] }
  0x72   : > { %1225 = vmatprep.subr.bf16.mxu1 %v1224_v6  ;;  %v202_v35 = vld [vmem:[#allocation5 + $0x38] sm:$0xff]  ;;  %v1236_v38 = vpack.c.bf16 %v200_v33, %v196_v32  ;;  %v199_v40 = vld [vmem:[#allocation5 + $0x20] sm:$0xff]  ;;  %v197_v41 = vld [vmem:[#allocation5 + $0x10] sm:$0xff] }
  0x73   : > { %v1268_v42 = vpack.c.bf16 %v202_v35, %v198_v34  ;;  %v201_v43 = vld [vmem:[#allocation5 + $0x30] sm:$0xff]  ;;  %v204_v44 = vld [vmem:[#allocation5 + $0x48] sm:$0xff]  ;;  %v206_v46 = vld [vmem:[#allocation5 + $0x58] sm:$0xff]  ;;  %v1238_v49 = vpack.c.bf16 %v199_v40, %v195_v39 }
  0x74   : > { %1195 = vmatpush1.bf16.msra.mxu0 %v1194_v12  ;;  %v208_v45 = vld [vmem:[#allocation5 + $0x68] sm:$0xff]  ;;  %v210_v47 = vld [vmem:[#allocation5 + $0x78] sm:$0xff]  ;;  %v1270_v50 = vpack.c.bf16 %v201_v43, %v197_v41  ;;  %v203_v52 = vld [vmem:[#allocation5 + $0x40] sm:$0xff] }
  0x75   : > { %1227 = vmatpush1.bf16.msra.mxu1 %v1226_v13  ;;  %1197 = vmatprep.subr.bf16.mxu0 %v1196_v14  ;;  %v1162_v48 = vld [vmem:[%s1845_s24 + $0x8] sm:$0xff]  ;;  %v1240_v51 = vpack.c.bf16 %v208_v45, %v204_v44  ;;  %v207_v53 = vld [vmem:[#allocation5 + $0x60] sm:$0xff]  ;;  %v205_v54 = vld [vmem:[#allocation5 + $0x50] sm:$0xff]  ;;  %v1272_v55 = vpack.c.bf16 %v210_v47, %v206_v46 }
  0x76   : > { %1229 = vmatprep.subr.bf16.mxu1 %v1228_v18  ;;  %v209_v56 = vld [vmem:[#allocation5 + $0x70] sm:$0xff]  ;;  %v212_v57 = vld [vmem:[#allocation5 + $0x88] sm:$0xff]  ;;  %v214_v59 = vld [vmem:[#allocation5 + $0x98] sm:$0xff]  ;;  %v1242_v61 = vpack.c.bf16 %v207_v53, %v203_v52 }
  0x77   : > { %v216_v58 = vld [vmem:[#allocation5 + $0xa8] sm:$0xff]  ;;  %v218_v60 = vld [vmem:[#allocation5 + $0xb8] sm:$0xff]  ;;  %v1274_v62 = vpack.c.bf16 %v209_v56, %v205_v54  ;;  %v211_v1 = vld [vmem:[#allocation5 + $0x80] sm:$0xff] }
  0x78   : > { %1199 = vmatpush1.bf16.msra.mxu0 %v1198_v24  ;;  %v1244_v63 = vpack.c.bf16 %v216_v58, %v212_v57  ;;  %v215_v2 = vld [vmem:[#allocation5 + $0xa0] sm:$0xff]  ;;  %v213_v3 = vld [vmem:[#allocation5 + $0x90] sm:$0xff]  ;;  %v1276_v4 = vpack.c.bf16 %v218_v60, %v214_v59  ;;  %v220_v6 = vld [vmem:[#allocation5 + $0xc8] sm:$0xff] }
  0x79   : > { %1231 = vmatpush1.bf16.msra.mxu1 %v1230_v25  ;;  %1201 = vmatprep.subr.bf16.mxu0 %v1200_v26  ;;  %v217_v5 = vld [vmem:[#allocation5 + $0xb0] sm:$0xff]  ;;  %v224_v7 = vld [vmem:[#allocation5 + $0xe8] sm:$0xff]  ;;  %v222_v8 = vld [vmem:[#allocation5 + $0xd8] sm:$0xff]  ;;  %v1246_v10 = vpack.c.bf16 %v215_v2, %v211_v1 }
  0x7a   : > { %1233 = vmatprep.subr.bf16.mxu1 %v1232_v30  ;;  %v226_v9 = vld [vmem:[#allocation5 + $0xf8] sm:$0xff]  ;;  %v1278_v11 = vpack.c.bf16 %v217_v5, %v213_v3  ;;  %v1248_v12 = vpack.c.bf16 %v224_v7, %v220_v6  ;;  %v219_v13 = vld [vmem:[#allocation5 + $0xc0] sm:$0xff]  ;;  %v221_v15 = vld [vmem:[#allocation5 + $0xd0] sm:$0xff] }
  0x7b   : > { %v223_v14 = vld [vmem:[#allocation5 + $0xe0] sm:$0xff]  ;;  %v1280_v16 = vpack.c.bf16 %v226_v9, %v222_v8  ;;  %v225_v17 = vld [vmem:[#allocation5 + $0xf0] sm:$0xff]  ;;  %v228_v18 = vld [vmem:[#allocation5 + $0x108] sm:$0xff] }
  0x7c   : > { %1203 = vmatpush1.bf16.msra.mxu0 %v1202_v36  ;;  %v232_v19 = vld [vmem:[#allocation5 + $0x128] sm:$0xff]  ;;  %v230_v20 = vld [vmem:[#allocation5 + $0x118] sm:$0xff]  ;;  %v1250_v22 = vpack.c.bf16 %v223_v14, %v219_v13  ;;  %v1282_v23 = vpack.c.bf16 %v225_v17, %v221_v15  ;;  %v227_v25 = vld [vmem:[#allocation5 + $0x100] sm:$0xff] }
  0x7d   : > { %1235 = vmatpush1.bf16.msra.mxu1 %v1234_v37  ;;  %1237 = vmatprep.subr.bf16.mxu0 %v1236_v38  ;;  %v234_v21 = vld [vmem:[#allocation5 + $0x138] sm:$0xff]  ;;  %v1252_v24 = vpack.c.bf16 %v232_v19, %v228_v18  ;;  %v231_v26 = vld [vmem:[#allocation5 + $0x120] sm:$0xff]  ;;  %v229_v27 = vld [vmem:[#allocation5 + $0x110] sm:$0xff] }
  0x7e   : > { %1269 = vmatprep.subr.bf16.mxu1 %v1268_v42  ;;  %v1284_v28 = vpack.c.bf16 %v234_v21, %v230_v20  ;;  %v233_v29 = vld [vmem:[#allocation5 + $0x130] sm:$0xff]  ;;  %v236_v30 = vld [vmem:[#allocation5 + $0x148] sm:$0xff]  ;;  %v238_v32 = vld [vmem:[#allocation5 + $0x158] sm:$0xff]  ;;  %v1254_v34 = vpack.c.bf16 %v231_v26, %v227_v25 }
  0x7f   : > { %391 = vmatmul.mubr.f32.vlgmr.msra.gmra.mrb[0].mxu0 %v1162_v48  ;;  %v240_v31 = vld [vmem:[#allocation5 + $0x168] sm:$0xff]  ;;  %v242_v33 = vld [vmem:[#allocation5 + $0x178] sm:$0xff]  ;;  %v1286_v35 = vpack.c.bf16 %v233_v29, %v229_v27  ;;  %v235_v37 = vld [vmem:[#allocation5 + $0x140] sm:$0xff] }
  0x80   : > { %462 = vmatmul.mubr.f32.vlgmr.msra.gmra.mrb[0].mxu1 %v1162_v48  ;;  %1239 = vmatpush1.bf16.msra.mxu0 %v1238_v49  ;;  %v1256_v36 = vpack.c.bf16 %v240_v31, %v236_v30  ;;  %v239_v38 = vld [vmem:[#allocation5 + $0x160] sm:$0xff]  ;;  %v237_v39 = vld [vmem:[#allocation5 + $0x150] sm:$0xff]  ;;  %v1288_v40 = vpack.c.bf16 %v242_v33, %v238_v32  ;;  %v244_v42 = vld [vmem:[#allocation5 + $0x188] sm:$0xff] }
  0x81   : > { %1271 = vmatpush1.bf16.msra.mxu1 %v1270_v50  ;;  %1241 = vmatprep.subr.bf16.mxu0 %v1240_v51  ;;  %v241_v41 = vld [vmem:[#allocation5 + $0x170] sm:$0xff]  ;;  %v248_v43 = vld [vmem:[#allocation5 + $0x1a8] sm:$0xff]  ;;  %v246_v44 = vld [vmem:[#allocation5 + $0x198] sm:$0xff]  ;;  %v1258_v46 = vpack.c.bf16 %v239_v38, %v235_v37 }
  0x82   : > { %1273 = vmatprep.subr.bf16.mxu1 %v1272_v55  ;;  %532 = vmatprep.mubr.f32.mxu0 %v1670_v0  ;;  %v250_v45 = vld [vmem:[#allocation5 + $0x1b8] sm:$0xff]  ;;  %v1290_v47 = vpack.c.bf16 %v241_v41, %v237_v39  ;;  %v1260_v48 = vpack.c.bf16 %v248_v43, %v244_v42  ;;  %v243_v49 = vld [vmem:[#allocation5 + $0x180] sm:$0xff]  ;;  %v245_v51 = vld [vmem:[#allocation5 + $0x190] sm:$0xff] }
  0x83   : > { %603 = vmatprep.mubr.f32.mxu1 %v1670_v0  ;;  %v247_v50 = vld [vmem:[#allocation5 + $0x1a0] sm:$0xff]  ;;  %v1292_v52 = vpack.c.bf16 %v250_v45, %v246_v44  ;;  %v249_v53 = vld [vmem:[#allocation5 + $0x1b0] sm:$0xff]  ;;  %v252_v54 = vld [vmem:[#allocation5 + $0x1c8] sm:$0xff] }
  0x84   : > { %1243 = vmatpush1.bf16.msra.mxu0 %v1242_v61  ;;  %v256_v55 = vld [vmem:[#allocation5 + $0x1e8] sm:$0xff]  ;;  %v254_v56 = vld [vmem:[#allocation5 + $0x1d8] sm:$0xff]  ;;  %v1262_v58 = vpack.c.bf16 %v247_v50, %v243_v49  ;;  %v1294_v59 = vpack.c.bf16 %v249_v53, %v245_v51  ;;  %v251_v61 = vld [vmem:[#allocation5 + $0x1c0] sm:$0xff] }
  0x85   : > { %1275 = vmatpush1.bf16.msra.mxu1 %v1274_v62  ;;  %1245 = vmatprep.subr.bf16.mxu0 %v1244_v63  ;;  %v258_v57 = vld [vmem:[#allocation5 + $0x1f8] sm:$0xff]  ;;  %v1264_v60 = vpack.c.bf16 %v256_v55, %v252_v54  ;;  %v255_v62 = vld [vmem:[#allocation5 + $0x1e0] sm:$0xff]  ;;  %v253_v63 = vld [vmem:[#allocation5 + $0x1d0] sm:$0xff] }
  0x86   : > { %1277 = vmatprep.subr.bf16.mxu1 %v1276_v4  ;;  %v1296_v1 = vpack.c.bf16 %v258_v57, %v254_v56  ;;  %v257_v2 = vld [vmem:[#allocation5 + $0x1f0] sm:$0xff]  ;;  %v614_v3 = vld [vmem:[#allocation5 + $0x408] sm:$0xff]  ;;  %v616_v5 = vld [vmem:[#allocation5 + $0x418] sm:$0xff]  ;;  %v1266_v7 = vpack.c.bf16 %v255_v62, %v251_v61 }
  0x87   : > { %v618_v4 = vld [vmem:[#allocation5 + $0x428] sm:$0xff]  ;;  %v620_v6 = vld [vmem:[#allocation5 + $0x438] sm:$0xff]  ;;  %v1298_v8 = vpack.c.bf16 %v257_v2, %v253_v63  ;;  %v619_v14 = vld [vmem:[#allocation5 + $0x430] sm:$0xff] }
  0x88   : > { %1247 = vmatpush1.bf16.msra.mxu0 %v1246_v10  ;;  %v1300_v9 = vpack.c.bf16 %v618_v4, %v614_v3  ;;  %v613_v10 = vld [vmem:[#allocation5 + $0x400] sm:$0xff]  ;;  %v1332_v13 = vpack.c.bf16 %v620_v6, %v616_v5  ;;  %v622_v15 = vld [vmem:[#allocation5 + $0x448] sm:$0xff]  ;;  %v624_v17 = vld [vmem:[#allocation5 + $0x458] sm:$0xff] }
  0x89   : > { %1279 = vmatpush1.bf16.msra.mxu1 %v1278_v11  ;;  %1249 = vmatprep.subr.bf16.mxu0 %v1248_v12  ;;  %v617_v11 = vld [vmem:[#allocation5 + $0x420] sm:$0xff]  ;;  %v615_v12 = vld [vmem:[#allocation5 + $0x410] sm:$0xff]  ;;  %v628_v18 = vld [vmem:[#allocation5 + $0x478] sm:$0xff] }
  0x8a   : > { %1281 = vmatprep.subr.bf16.mxu1 %v1280_v16  ;;  %v626_v16 = vld [vmem:[#allocation5 + $0x468] sm:$0xff]  ;;  %v194_v19 = vld [vmem:[%s1845_s24] sm:$0xff]  ;;  %v1302_v20 = vpack.c.bf16 %v617_v11, %v613_v10  ;;  %v1334_v21 = vpack.c.bf16 %v619_v14, %v615_v12  ;;  %v623_v25 = vld [vmem:[#allocation5 + $0x450] sm:$0xff]  ;;  %v1336_v26 = vpack.c.bf16 %v628_v18, %v624_v17 }
  0x8b   : > { %v627_v27 = vld [vmem:[#allocation5 + $0x470] sm:$0xff]  ;;  %v634_v29 = vld [vmem:[#allocation5 + $0x4a8] sm:$0xff]  ;;  %v632_v30 = vld [vmem:[#allocation5 + $0x498] sm:$0xff] }
  0x8c   : > { %1251 = vmatpush1.bf16.msra.mxu0 %v1250_v22  ;;  %v1304_v22 = vpack.c.bf16 %v626_v16, %v622_v15  ;;  %v636_v31 = vld [vmem:[#allocation5 + $0x4b8] sm:$0xff]  ;;  %v1338_v33 = vpack.c.bf16 %v627_v27, %v623_v25  ;;  %v631_v37 = vld [vmem:[#allocation5 + $0x490] sm:$0xff]  ;;  %v642_v41 = vld [vmem:[#allocation5 + $0x4e8] sm:$0xff] }
  0x8d   : > { %1283 = vmatpush1.bf16.msra.mxu1 %v1282_v23  ;;  %1253 = vmatprep.subr.bf16.mxu0 %v1252_v24  ;;  %v621_v23 = vld [vmem:[#allocation5 + $0x440] sm:$0xff]  ;;  %v1340_v38 = vpack.c.bf16 %v636_v31, %v632_v30  ;;  %v635_v39 = vld [vmem:[#allocation5 + $0x4b0] sm:$0xff]  ;;  %v640_v42 = vld [vmem:[#allocation5 + $0x4d8] sm:$0xff] }
  0x8e   : > { %1285 = vmatprep.subr.bf16.mxu1 %v1284_v28  ;;  %v625_v24 = vld [vmem:[#allocation5 + $0x460] sm:$0xff]  ;;  %v630_v28 = vld [vmem:[#allocation5 + $0x488] sm:$0xff]  ;;  %v644_v43 = vld [vmem:[#allocation5 + $0x4f8] sm:$0xff]  ;;  %v1342_v45 = vpack.c.bf16 %v635_v39, %v631_v37 }
  0x8f   : > { %v1306_v32 = vpack.c.bf16 %v625_v24, %v621_v23  ;;  %v639_v49 = vld [vmem:[#allocation5 + $0x4d0] sm:$0xff]  ;;  %v1344_v50 = vpack.c.bf16 %v644_v43, %v640_v42  ;;  %v650_v53 = vld [vmem:[#allocation5 + $0x528] sm:$0xff]  ;;  %v648_v54 = vld [vmem:[#allocation5 + $0x518] sm:$0xff] }
  0x90   : > { %1255 = vmatpush1.bf16.msra.mxu0 %v1254_v34  ;;  %v1308_v34 = vpack.c.bf16 %v634_v29, %v630_v28  ;;  %v643_v51 = vld [vmem:[#allocation5 + $0x4f0] sm:$0xff]  ;;  %v652_v55 = vld [vmem:[#allocation5 + $0x538] sm:$0xff]  ;;  %v658_v2 = vld [vmem:[#allocation5 + $0x568] sm:$0xff] }
  0x91   : > { %1287 = vmatpush1.bf16.msra.mxu1 %v1286_v35  ;;  %1257 = vmatprep.subr.bf16.mxu0 %v1256_v36  ;;  %v629_v35 = vld [vmem:[#allocation5 + $0x480] sm:$0xff]  ;;  %v1346_v57 = vpack.c.bf16 %v643_v51, %v639_v49  ;;  %v647_v61 = vld [vmem:[#allocation5 + $0x510] sm:$0xff]  ;;  %v1348_v62 = vpack.c.bf16 %v652_v55, %v648_v54  ;;  %v656_v3 = vld [vmem:[#allocation5 + $0x558] sm:$0xff] }
  0x92   : > { %1289 = vmatprep.subr.bf16.mxu1 %v1288_v40  ;;  %v633_v36 = vld [vmem:[#allocation5 + $0x4a0] sm:$0xff]  ;;  %v638_v40 = vld [vmem:[#allocation5 + $0x4c8] sm:$0xff]  ;;  %v651_v63 = vld [vmem:[#allocation5 + $0x530] sm:$0xff] }
  0x93   : > { %v1310_v44 = vpack.c.bf16 %v633_v36, %v629_v35  ;;  %v660_v4 = vld [vmem:[#allocation5 + $0x578] sm:$0xff]  ;;  %v1350_v6 = vpack.c.bf16 %v651_v63, %v647_v61  ;;  %v655_v10 = vld [vmem:[#allocation5 + $0x550] sm:$0xff]  ;;  %v666_v14 = vld [vmem:[#allocation5 + $0x5a8] sm:$0xff] }
  0x94   : > { %1259 = vmatpush1.bf16.msra.mxu0 %v1258_v46  ;;  %v1312_v46 = vpack.c.bf16 %v642_v41, %v638_v40  ;;  %v1352_v11 = vpack.c.bf16 %v660_v4, %v656_v3  ;;  %v659_v12 = vld [vmem:[#allocation5 + $0x570] sm:$0xff]  ;;  %v664_v15 = vld [vmem:[#allocation5 + $0x598] sm:$0xff]  ;;  %v670_v25 = vld [vmem:[#allocation5 + $0x5c8] sm:$0xff] }
  0x95   : > { %1291 = vmatpush1.bf16.msra.mxu1 %v1290_v47  ;;  %1261 = vmatprep.subr.bf16.mxu0 %v1260_v48  ;;  %v637_v47 = vld [vmem:[#allocation5 + $0x4c0] sm:$0xff]  ;;  %v668_v16 = vld [vmem:[#allocation5 + $0x5b8] sm:$0xff]  ;;  %v1354_v18 = vpack.c.bf16 %v659_v12, %v655_v10  ;;  %v667_v24 = vld [vmem:[#allocation5 + $0x5b0] sm:$0xff] }
  0x96   : > { %1293 = vmatprep.subr.bf16.mxu1 %v1292_v52  ;;  %v641_v48 = vld [vmem:[#allocation5 + $0x4e0] sm:$0xff]  ;;  %v646_v52 = vld [vmem:[#allocation5 + $0x508] sm:$0xff]  ;;  %v1356_v23 = vpack.c.bf16 %v668_v16, %v664_v15  ;;  %v672_v27 = vld [vmem:[#allocation5 + $0x5d8] sm:$0xff] }
  0x97   : > { %v1314_v56 = vpack.c.bf16 %v641_v48, %v637_v47  ;;  %v676_v28 = vld [vmem:[#allocation5 + $0x5f8] sm:$0xff]  ;;  %v675_v36 = vld [vmem:[#allocation5 + $0x5f0] sm:$0xff]  ;;  %v827_v37 = vld [vmem:[#allocation5 + $0x608] sm:$0xff] }
  0x98   : > { %1263 = vmatpush1.bf16.msra.mxu0 %v1262_v58  ;;  %v1316_v58 = vpack.c.bf16 %v650_v53, %v646_v52  ;;  %v1360_v35 = vpack.c.bf16 %v676_v28, %v672_v27  ;;  %v829_v39 = vld [vmem:[#allocation5 + $0x618] sm:$0xff]  ;;  %v832_v48 = vld [vmem:[#allocation5 + $0x630] sm:$0xff]  ;;  %v835_v49 = vld [vmem:[#allocation5 + $0x648] sm:$0xff] }
  0x99   : > { %1295 = vmatpush1.bf16.msra.mxu1 %v1294_v59  ;;  %1265 = vmatprep.subr.bf16.mxu0 %v1264_v60  ;;  %v645_v59 = vld [vmem:[#allocation5 + $0x500] sm:$0xff]  ;;  %v833_v40 = vld [vmem:[#allocation5 + $0x638] sm:$0xff]  ;;  %v1163_v53 = vld [vmem:[%s1845_s24 + $0x10] sm:$0xff] }
  0x9a   : > { %1297 = vmatprep.subr.bf16.mxu1 %v1296_v1  ;;  %v649_v60 = vld [vmem:[#allocation5 + $0x520] sm:$0xff]  ;;  %v654_v1 = vld [vmem:[#allocation5 + $0x548] sm:$0xff]  ;;  %v1396_v47 = vpack.c.bf16 %v833_v40, %v829_v39  ;;  %v837_v51 = vld [vmem:[#allocation5 + $0x658] sm:$0xff] }
  0x9b   : > { %v1318_v5 = vpack.c.bf16 %v649_v60, %v645_v59  ;;  %v841_v52 = vld [vmem:[#allocation5 + $0x678] sm:$0xff]  ;;  %v836_v59 = vld [vmem:[#allocation5 + $0x650] sm:$0xff]  ;;  %v847_v63 = vld [vmem:[#allocation5 + $0x6a8] sm:$0xff] }
  0x9c   : > { %1267 = vmatpush1.bf16.msra.mxu0 %v1266_v7  ;;  %v1320_v7 = vpack.c.bf16 %v658_v2, %v654_v1  ;;  %v1400_v60 = vpack.c.bf16 %v841_v52, %v837_v51  ;;  %v840_v61 = vld [vmem:[#allocation5 + $0x670] sm:$0xff]  ;;  %v845_v1 = vld [vmem:[#allocation5 + $0x698] sm:$0xff]  ;;  %v855_v12 = vld [vmem:[#allocation5 + $0x6e8] sm:$0xff] }
  0x9d   : > { %1299 = vmatpush1.bf16.msra.mxu1 %v1298_v8  ;;  %1301 = vmatprep.subr.bf16.mxu0 %v1300_v9  ;;  %v653_v8 = vld [vmem:[#allocation5 + $0x540] sm:$0xff]  ;;  %v849_v2 = vld [vmem:[#allocation5 + $0x6b8] sm:$0xff]  ;;  %v1402_v4 = vpack.c.bf16 %v840_v61, %v836_v59  ;;  %v848_v10 = vld [vmem:[#allocation5 + $0x6b0] sm:$0xff] }
  0x9e   : > { %1333 = vmatprep.subr.bf16.mxu1 %v1332_v13  ;;  %v657_v9 = vld [vmem:[#allocation5 + $0x560] sm:$0xff]  ;;  %v662_v13 = vld [vmem:[#allocation5 + $0x588] sm:$0xff]  ;;  %v889_v61 = vld [vmem:[#allocation5 + $0x7f8] sm:$0xff] }
  0x9f   : > { %533 = vmatmul.mubr.f32.vlgmr.msra.gmra.mrb[0].mxu0 %v194_v19  ;;  %v1322_v17 = vpack.c.bf16 %v657_v9, %v653_v8  ;;  %v844_v8 = vld [vmem:[#allocation5 + $0x690] sm:$0xff]  ;;  %v1404_v9 = vpack.c.bf16 %v849_v2, %v845_v1  ;;  %v887_v59 = vld [vmem:[#allocation5 + $0x7e8] sm:$0xff]  ;;  %v882_v2 = vld [vmem:[#allocation5 + $0x7c0] sm:$0xff] }
  0xa0   : > { %604 = vmatmul.mubr.f32.vlgmr.msra.gmra.mrb[0].mxu1 %v194_v19  ;;  %1303 = vmatpush1.bf16.msra.mxu0 %v1302_v20  ;;  %v1324_v19 = vpack.c.bf16 %v666_v14, %v662_v13  ;;  %v661_v20 = vld [vmem:[#allocation5 + $0x580] sm:$0xff]  ;;  %v853_v13 = vld [vmem:[#allocation5 + $0x6d8] sm:$0xff]  ;;  %v1406_v16 = vpack.c.bf16 %v848_v10, %v844_v8 }
  0xa1   : > { %1335 = vmatpush1.bf16.msra.mxu1 %v1334_v21  ;;  %1305 = vmatprep.subr.bf16.mxu0 %v1304_v22  ;;  %v665_v21 = vld [vmem:[#allocation5 + $0x5a0] sm:$0xff]  ;;  %v663_v22 = vld [vmem:[#allocation5 + $0x590] sm:$0xff]  ;;  %v857_v14 = vld [vmem:[#allocation5 + $0x6f8] sm:$0xff] }
  0xa2   : > { %1337 = vmatprep.subr.bf16.mxu1 %v1336_v26  ;;  %741 = vmatprep.mubr.f32.mxu0 %v1670_v0  ;;  %v674_v26 = vld [vmem:[#allocation5 + $0x5e8] sm:$0xff]  ;;  %v1326_v29 = vpack.c.bf16 %v665_v21, %v661_v20  ;;  %v1358_v30 = vpack.c.bf16 %v667_v24, %v663_v22  ;;  %v852_v20 = vld [vmem:[#allocation5 + $0x6d0] sm:$0xff]  ;;  %v1408_v21 = vpack.c.bf16 %v857_v14, %v853_v13 }
  0xa3   : > { %812 = vmatprep.mubr.f32.mxu1 %v1670_v0  ;;  %v1328_v31 = vpack.c.bf16 %v674_v26, %v670_v25  ;;  %v856_v22 = vld [vmem:[#allocation5 + $0x6f0] sm:$0xff]  ;;  %v863_v24 = vld [vmem:[#allocation5 + $0x728] sm:$0xff]  ;;  %v861_v25 = vld [vmem:[#allocation5 + $0x718] sm:$0xff] }
  0xa4   : > { %1307 = vmatpush1.bf16.msra.mxu0 %v1306_v32  ;;  %v669_v32 = vld [vmem:[#allocation5 + $0x5c0] sm:$0xff]  ;;  %v865_v26 = vld [vmem:[#allocation5 + $0x738] sm:$0xff] }
  0xa5   : > { %1339 = vmatpush1.bf16.msra.mxu1 %v1338_v33  ;;  %1309 = vmatprep.subr.bf16.mxu0 %v1308_v34  ;;  %v673_v33 = vld [vmem:[#allocation5 + $0x5e0] sm:$0xff]  ;;  %v671_v34 = vld [vmem:[#allocation5 + $0x5d0] sm:$0xff] }
  0xa6   : > { %1341 = vmatprep.subr.bf16.mxu1 %v1340_v38  ;;  %v831_v38 = vld [vmem:[#allocation5 + $0x628] sm:$0xff]  ;;  %v1330_v41 = vpack.c.bf16 %v673_v33, %v669_v32  ;;  %v1362_v42 = vpack.c.bf16 %v675_v36, %v671_v34  ;;  %v1412_v32 = vpack.c.bf16 %v865_v26, %v861_v25  ;;  %v864_v33 = vld [vmem:[#allocation5 + $0x730] sm:$0xff]  ;;  %v869_v36 = vld [vmem:[#allocation5 + $0x758] sm:$0xff] }
  0xa7   : > { %v1364_v43 = vpack.c.bf16 %v831_v38, %v827_v37  ;;  %v867_v34 = vld [vmem:[#allocation5 + $0x748] sm:$0xff]  ;;  %v873_v37 = vld [vmem:[#allocation5 + $0x778] sm:$0xff] }
  0xa8   : > { %1311 = vmatpush1.bf16.msra.mxu0 %v1310_v44  ;;  %v826_v44 = vld [vmem:[#allocation5 + $0x600] sm:$0xff] }
  0xa9   : > { %1343 = vmatpush1.bf16.msra.mxu1 %v1342_v45  ;;  %1313 = vmatprep.subr.bf16.mxu0 %v1312_v46  ;;  %v830_v45 = vld [vmem:[#allocation5 + $0x620] sm:$0xff]  ;;  %v828_v46 = vld [vmem:[#allocation5 + $0x610] sm:$0xff] }
  0xaa   : > { %1345 = vmatprep.subr.bf16.mxu1 %v1344_v50  ;;  %v839_v50 = vld [vmem:[#allocation5 + $0x668] sm:$0xff]  ;;  %v1366_v54 = vpack.c.bf16 %v830_v45, %v826_v44  ;;  %v1398_v55 = vpack.c.bf16 %v832_v48, %v828_v46  ;;  %v1416_v44 = vpack.c.bf16 %v873_v37, %v869_v36  ;;  %v872_v45 = vld [vmem:[#allocation5 + $0x770] sm:$0xff]  ;;  %v877_v48 = vld [vmem:[#allocation5 + $0x798] sm:$0xff] }
  0xab   : > { %v875_v46 = vld [vmem:[#allocation5 + $0x788] sm:$0xff] }
  0xac   : > { %1315 = vmatpush1.bf16.msra.mxu0 %v1314_v56  ;;  %v1368_v56 = vpack.c.bf16 %v839_v50, %v835_v49  ;;  %v881_v49 = vld [vmem:[#allocation5 + $0x7b8] sm:$0xff] }
  0xad   : > { %1347 = vmatpush1.bf16.msra.mxu1 %v1346_v57  ;;  %1317 = vmatprep.subr.bf16.mxu0 %v1316_v58  ;;  %v834_v57 = vld [vmem:[#allocation5 + $0x640] sm:$0xff] }
  0xae   : > { %1349 = vmatprep.subr.bf16.mxu1 %v1348_v62  ;;  %v838_v58 = vld [vmem:[#allocation5 + $0x660] sm:$0xff]  ;;  %v843_v62 = vld [vmem:[#allocation5 + $0x688] sm:$0xff] }
  0xaf   : > { %v1370_v3 = vpack.c.bf16 %v838_v58, %v834_v57  ;;  %v880_v57 = vld [vmem:[#allocation5 + $0x7b0] sm:$0xff]  ;;  %v883_v58 = vld [vmem:[#allocation5 + $0x7c8] sm:$0xff] }
  0xb0   : > { %1319 = vmatpush1.bf16.msra.mxu0 %v1318_v5  ;;  %v1372_v5 = vpack.c.bf16 %v847_v63, %v843_v62  ;;  %v1392_v1 = vpack.c.bf16 %v887_v59, %v883_v58 }
  0xb1   : > { %1351 = vmatpush1.bf16.msra.mxu1 %v1350_v6  ;;  %1321 = vmatprep.subr.bf16.mxu0 %v1320_v7  ;;  %v842_v6 = vld [vmem:[#allocation5 + $0x680] sm:$0xff] }
  0xb2   : > { %1353 = vmatprep.subr.bf16.mxu1 %v1352_v11  ;;  %v846_v7 = vld [vmem:[#allocation5 + $0x6a0] sm:$0xff]  ;;  %v851_v11 = vld [vmem:[#allocation5 + $0x6c8] sm:$0xff] }
  0xb3   : > { %v1374_v15 = vpack.c.bf16 %v846_v7, %v842_v6  ;;  %v888_v6 = vld [vmem:[#allocation5 + $0x7f0] sm:$0xff] }
  0xb4   : > { %1323 = vmatpush1.bf16.msra.mxu0 %v1322_v17  ;;  %v1376_v17 = vpack.c.bf16 %v855_v12, %v851_v11 }
  0xb5   : > { %1355 = vmatpush1.bf16.msra.mxu1 %v1354_v18  ;;  %1325 = vmatprep.subr.bf16.mxu0 %v1324_v19  ;;  %v850_v18 = vld [vmem:[#allocation5 + $0x6c0] sm:$0xff] }
  0xb6   : > { %1357 = vmatprep.subr.bf16.mxu1 %v1356_v23  ;;  %v854_v19 = vld [vmem:[#allocation5 + $0x6e0] sm:$0xff]  ;;  %v859_v23 = vld [vmem:[#allocation5 + $0x708] sm:$0xff] }
  0xb7   : > { %v1378_v27 = vpack.c.bf16 %v854_v19, %v850_v18  ;;  %v1380_v28 = vpack.c.bf16 %v863_v24, %v859_v23 }
  0xb8   : > { %1327 = vmatpush1.bf16.msra.mxu0 %v1326_v29  ;;  %v858_v29 = vld [vmem:[#allocation5 + $0x700] sm:$0xff] }
  0xb9   : > { %1359 = vmatpush1.bf16.msra.mxu1 %v1358_v30  ;;  %1329 = vmatprep.subr.bf16.mxu0 %v1328_v31  ;;  %v862_v30 = vld [vmem:[#allocation5 + $0x720] sm:$0xff]  ;;  %v860_v31 = vld [vmem:[#allocation5 + $0x710] sm:$0xff] }
  0xba   : > { %1361 = vmatprep.subr.bf16.mxu1 %v1360_v35  ;;  %v871_v35 = vld [vmem:[#allocation5 + $0x768] sm:$0xff]  ;;  %v1382_v38 = vpack.c.bf16 %v862_v30, %v858_v29  ;;  %v1414_v39 = vpack.c.bf16 %v864_v33, %v860_v31 }
  0xbb   : > { %v1384_v40 = vpack.c.bf16 %v871_v35, %v867_v34 }
  0xbc   : > { %1331 = vmatpush1.bf16.msra.mxu0 %v1330_v41  ;;  %v866_v41 = vld [vmem:[#allocation5 + $0x740] sm:$0xff] }
  0xbd   : > { %1363 = vmatpush1.bf16.msra.mxu1 %v1362_v42  ;;  %1365 = vmatprep.subr.bf16.mxu0 %v1364_v43  ;;  %v870_v42 = vld [vmem:[#allocation5 + $0x760] sm:$0xff]  ;;  %v868_v43 = vld [vmem:[#allocation5 + $0x750] sm:$0xff] }
  0xbe   : > { %1397 = vmatprep.subr.bf16.mxu1 %v1396_v47  ;;  %v879_v47 = vld [vmem:[#allocation5 + $0x7a8] sm:$0xff]  ;;  %v1386_v50 = vpack.c.bf16 %v870_v42, %v866_v41  ;;  %v1418_v51 = vpack.c.bf16 %v872_v45, %v868_v43 }
  0xbf   : > { %742 = vmatmul.mubr.f32.vlgmr.msra.gmra.mrb[0].mxu0 %v1163_v53  ;;  %v1388_v52 = vpack.c.bf16 %v879_v47, %v875_v46 }
  0xc0   : > { %813 = vmatmul.mubr.f32.vlgmr.msra.gmra.mrb[0].mxu1 %v1163_v53  ;;  %1367 = vmatpush1.bf16.msra.mxu0 %v1366_v54  ;;  %v874_v53 = vld [vmem:[#allocation5 + $0x780] sm:$0xff] }
  0xc1   : > { %1399 = vmatpush1.bf16.msra.mxu1 %v1398_v55  ;;  %1369 = vmatprep.subr.bf16.mxu0 %v1368_v56  ;;  %v878_v54 = vld [vmem:[#allocation5 + $0x7a0] sm:$0xff]  ;;  %v876_v55 = vld [vmem:[#allocation5 + $0x790] sm:$0xff]  ;;  %v1420_v56 = vpack.c.bf16 %v881_v49, %v877_v48 }
  0xc2   : > { %1401 = vmatprep.subr.bf16.mxu1 %v1400_v60  ;;  %954 = vmatprep.mubr.f32.mxu0 %v1670_v0  ;;  %v885_v60 = vld [vmem:[#allocation5 + $0x7d8] sm:$0xff]  ;;  %v1390_v62 = vpack.c.bf16 %v878_v54, %v874_v53  ;;  %v1422_v63 = vpack.c.bf16 %v880_v57, %v876_v55 }
  0xc3   : > { %1025 = vmatprep.mubr.f32.mxu1 %v1670_v0  ;;  %v1410_v0 = vpack.c.bf16 %v856_v22, %v852_v20 }
  0xc4   : > { %1371 = vmatpush1.bf16.msra.mxu0 %v1370_v3  ;;  %v886_v3 = vld [vmem:[#allocation5 + $0x7e0] sm:$0xff] }
  0xc5   : > { %1403 = vmatpush1.bf16.msra.mxu1 %v1402_v4  ;;  %1373 = vmatprep.subr.bf16.mxu0 %v1372_v5  ;;  %v1424_v4 = vpack.c.bf16 %v889_v61, %v885_v60  ;;  %v884_v5 = vld [vmem:[#allocation5 + $0x7d0] sm:$0xff]  ;;  %v1394_v7 = vpack.c.bf16 %v886_v3, %v882_v2 }
  0xc6   : > { %1405 = vmatprep.subr.bf16.mxu1 %v1404_v9  ;;  %v1426_v8 = vpack.c.bf16 %v888_v6, %v884_v5  ;;  %v1164_v9 = vld [vmem:[%s1845_s24 + $0x18] sm:$0xff] }
  0xc8   : > { %1375 = vmatpush1.bf16.msra.mxu0 %v1374_v15 }
  0xc9   : > { %1407 = vmatpush1.bf16.msra.mxu1 %v1406_v16  ;;  %1377 = vmatprep.subr.bf16.mxu0 %v1376_v17 }
  0xca   : > { %1409 = vmatprep.subr.bf16.mxu1 %v1408_v21 }
  0xcc   : > { %1379 = vmatpush1.bf16.msra.mxu0 %v1378_v27 }
  0xcd   : > { %1411 = vmatpush1.bf16.msra.mxu1 %v1410_v0  ;;  %1381 = vmatprep.subr.bf16.mxu0 %v1380_v28 }
  0xce   : > { %1413 = vmatprep.subr.bf16.mxu1 %v1412_v32 }
  0xd0   : > { %1383 = vmatpush1.bf16.msra.mxu0 %v1382_v38 }
  0xd1   : > { %1415 = vmatpush1.bf16.msra.mxu1 %v1414_v39  ;;  %1385 = vmatprep.subr.bf16.mxu0 %v1384_v40 }
  0xd2   : > { %1417 = vmatprep.subr.bf16.mxu1 %v1416_v44 }
  0xd4   : > { %1387 = vmatpush1.bf16.msra.mxu0 %v1386_v50 }
  0xd5   : > { %1419 = vmatpush1.bf16.msra.mxu1 %v1418_v51  ;;  %1389 = vmatprep.subr.bf16.mxu0 %v1388_v52 }
  0xd6   : > { %1421 = vmatprep.subr.bf16.mxu1 %v1420_v56 }
  0xd8   : > { %1391 = vmatpush1.bf16.msra.mxu0 %v1390_v62 }
  0xd9   : > { %1423 = vmatpush1.bf16.msra.mxu1 %v1422_v63  ;;  %1393 = vmatprep.subr.bf16.mxu0 %v1392_v1 }
  0xda   : > { %1425 = vmatprep.subr.bf16.mxu1 %v1424_v4 }
  0xdc   : > { %1395 = vmatpush1.bf16.msra.mxu0 %v1394_v7 }
  0xdd   : > { %1427 = vmatpush1.bf16.msra.mxu1 %v1426_v8 }
  0xdf   : > { %955 = vmatmul.mubr.f32.vlgmr.msra.gmra.mrb[0].mxu0 %v1164_v9 }
  0xe0   : > { %1026 = vmatmul.mubr.f32.vlgmr.msra.gmra.mrb[0].mxu1 %v1164_v9 }
 0x1b2   : > { %v956_v10 = vpop.f32.mrb[0].mxu0 }
 0x1b3   : > { %1036 = vst [vmem:[%s193_s17] sm:$0xff] %v956_v10  ;;  %v1027_v11 = vpop.f32.mrb[0].mxu1  ;;  %v958_v12 = vpop.f32.mrb[1].mxu0 }
 0x1b4   : > { %1038 = vst [vmem:[%s193_s17 + $0x10] sm:$0xff] %v1027_v11  ;;  %1037 = vst [vmem:[%s193_s17 + $0x8] sm:$0xff] %v958_v12  ;;  %v1029_v13 = vpop.f32.mrb[1].mxu1 }
 0x1b5   : > { %1039 = vst [vmem:[%s193_s17 + $0x18] sm:$0xff] %v1029_v13 }
 0x1b6   : > { %1589 = shalt.err (!%p1586_p5)
}
 0x1b7   : > { %s1590_s30 = scalar_lea.hbm %s1875_s6, 512  ;;  %s1594_s8 = scalar_lea.hbm %s1924_s2, 1024 }
 0x1b8   : > { %p1591_p9 = scmp.ne.s32.totalorder %s1875_s6, %s1590_s30  ;;  %p1595_p3 = scmp.lt.u32.totalorder %s1875_s6, %s1924_s2 }
 0x1b9   : > { %p1596_p7 = scmp.lt.u32.totalorder %s1594_s8, %s1590_s30  ;;  %p1598_p4 = scmp.lt.u32.totalorder %s1590_s30, %s1875_s6 }
 0x1ba   : > { %p1592_p1 = pnand %p1591_p9, %p1783_p10 }
 0x1bb   : > { %p1597_p13 = por %p1596_p7, %p1595_p3 }
 0x1bc   : > { %p1593_p2 = pneg %p1592_p1 }
 0x1bd   : > { %p1599_p6 = por %p1598_p4, %p1597_p13 }
 0x1bf   : > { %p1600_p8 = pnand %p1599_p6, %p1593_p2 }
 0x1c1   : > { %1603 = shalt.err (!%p1600_p8)
}
 0x1c2   : > { %1446 = dma.vmem_to_hbm [thread:$0]  (%p1783_p10), %s1870_s19, 512, %s1875_s6, %s1041_s7  }
 0x1c3 PF: > { %s1069_s22 = sand.u32 1, %s1642_s9   ;;  %p1942_p12 = scmp.ne.s32.totalorder %s1932_s20, 0 }
 0x1c4   : > { %p1943_p11 = scmp.ge.s32.totalorder %s1662_s14, 2  ;;  %s1070_s24 = scalar_lea.sflag [#allocation4], %s1069_s22 }
 0x1c6   : > { %p1457_p0 = pnand %p1943_p11, %p1942_p12 }
 0x1c8   : > { %1637 = dma.done.wait (!%p1457_p0), %s1070_s24, 512  }
 0x1c9   : > { %1639 = vsyncadd (!%p1457_p0), %s1070_s24, 4294966784  ;;  %s19_s14 = sadd.s32 1, %s1662_s14   ;;  %s1944_s9 = smov %s1646_s10 }
 0x1ca   : > { %p16_p5 = scmp.ge.s32.totalorder %s19_s14, 4   ;;  %s1945_s10 = smov %s1650_s11 }
 0x1cb   : > { %s1946_s11 = smov %s1792_s28  ;;  %s1947_s12 = smov %s1658_s13 }
 0x1cc   : > { %s1948_s13 = smov %s1950_s25  ;;  %18 = sbr.rel (!%p16_p5) target bundleno = 7 (0x7), region = 83 }
 0x1d3   :  { %1075 = vsyncpa [#allocation3], 1 }
 0x1d4   :  { %1077 = vsyncpa [#allocation3 + $0x1], 1 }
 0x1d5   :  { %1078 = vsyncpa [#allocation6], 1 }
 0x1d6   :  { %1079 = vsyncpa [#allocation4], 1 }
 0x1d7   :  { %1081 = vsyncpa [#allocation4 + $0x1], 1 }

</bundles_post_ra>
